<compile_context>
chip_gen: v7x
topology: tpu7x:2x2x1
jax: 0.10.0
libtpu: 0.0.40
codegen_flags: <defaults>
</compile_context>

<pallas_src>
import functools

import jax
import jax.numpy as jnp
from jax.experimental import pallas as pl
from jax.experimental.pallas import tpu as pltpu


def _aplayer_kernel(x_ref, p_ref, o_ref, mem_ref, pooled_ref, *,
                    thresh, tau, C, Tc, inv_kk):
    """x_ref: (Tc*C, S); p_ref: (S, Sp); o_ref: (Tc*C, Sp);
    mem_ref: (C, Sp) persistent; pooled_ref: (Tc*C, Sp) scratch."""
    t_blk = pl.program_id(1)

    @pl.when(t_blk == 0)
    def _reset():
        mem_ref[...] = jnp.zeros_like(mem_ref)

    # AvgPool2d for the whole T-block: ONE large-M MXU matmul, hoisted out of
    # the recurrence.  f32 accumulate; 1/k^2 applied afterwards in f32.
    pooled_ref[...] = jnp.dot(
        x_ref[...], p_ref[...], preferred_element_type=jnp.float32) * inv_kk

    # LIF recurrence over the Tc frames of this block: pure VPU ops through
    # the VMEM membrane scratch (short static loop; Tc is capped).
    for i in range(Tc):
        lo = i * C                                   # rows of frame i in block
        mem = mem_ref[...] * tau + pooled_ref[lo:lo + C, :]   # integrate
        spike = ((mem - thresh) > 0.0).astype(jnp.float32)    # ZIF forward
        o_ref[lo:lo + C, :] = spike.astype(o_ref.dtype)
        mem_ref[...] = (1.0 - spike) * mem                    # hard reset


def _build_pool_matrix(H, W, k):
    """One-hot (S, Sp) matrix: column = pooled pixel, 0/1 entries.
    Remainder rows/cols (H % k, W % k) are cropped like nn.AvgPool2d."""
    Hp, Wp = H // k, W // k
    S, Sp = H * W, Hp * Wp
    s = jnp.arange(S, dtype=jnp.int32)
    h, w = s // W, s % W
    valid = (h < Hp * k) & (w < Wp * k)
    tgt = jnp.where(valid, (h // k) * Wp + (w // k), Sp)   # Sp == "no column"
    cols = jnp.arange(Sp, dtype=jnp.int32)
    return (tgt[:, None] == cols[None, :]).astype(jnp.float32)


_TC_UNROLL_CAP = 32   # bound the static recurrence unroll per grid step


def _choose_tc(T, C, S, Sp, budget_bytes):
    """Largest Tc (divisor of T, block row count 8-aligned, <= cap) fitting."""
    def usage(tc):
        in_blk = tc * C * S * 4          # double-buffered input block
        out_blk = tc * C * Sp * 4        # double-buffered output block
        pooled = tc * C * Sp * 4         # pooled scratch
        p_mat = S * Sp * 4               # pooling matrix (constant block)
        mem = max(C, 8) * max(Sp, 128) * 4
        return 2 * in_blk + 2 * out_blk + pooled + 2 * p_mat + mem

    def legal(tc):
        return T % tc == 0 and ((tc * C) % 8 == 0 or tc == T)

    for tc in range(min(T, _TC_UNROLL_CAP), 0, -1):
        if legal(tc) and usage(tc) <= budget_bytes:
            return tc, usage(tc)
    # Fall back to the smallest legal T-block even if it busts the budget;
    # vmem_limit_bytes is raised to match below.
    # TODO(synk): add a channel-splitting path for the (rare) case where a
    # single (C, S) frame slab is itself too large for VMEM.
    for tc in range(1, T + 1):
        if legal(tc):
            return tc, usage(tc)
    return T, usage(T)   # unreachable (tc == T is always legal)


def aplayer_forward(x, kernel_size, thresh=1.0, tau=0.5):
    """x: [B, T, C, H, W] float32 -> spikes [B, T, C, H//k, W//k] float32."""
    B, T, C, H, W = x.shape
    k = int(kernel_size)
    Hp, Wp = H // k, W // k
    S, Sp = H * W, Hp * Wp
    inv_kk = 1.0 / (k * k)

    # Free reshape only (contiguous merge of T and C), no transposes.
    x_flat = x.reshape(B, T * C, S)
    p_mat = _build_pool_matrix(H, W, k)

    # --- per-generation VMEM budget (v7x: 64 MiB, v5e/v6e: 128 MiB) ---
    try:
        info = pltpu.get_tpu_info()
        vmem_cap = int(getattr(info, "vmem_capacity_bytes", 64 * 1024 * 1024))
    except Exception:  # pragma: no cover - conservative fallback
        vmem_cap = 64 * 1024 * 1024
    budget = max(8 * 1024 * 1024, vmem_cap // 2)   # leave headroom for scratch

    Tc, usage = _choose_tc(T, C, S, Sp, budget)
    R = Tc * C
    grid = (B, T // Tc)
    vmem_limit = int(min(int(0.9 * vmem_cap),
                         max(32 * 1024 * 1024, 2 * usage)))

    # TODO(synk): when B == 1 the parallel grid extent is 1, leaving the second
    # TensorCore idle on v7x; a spatial (H-group) split would restore it.

    kernel = functools.partial(_aplayer_kernel, thresh=float(thresh),
                               tau=float(tau), C=C, Tc=Tc, inv_kk=inv_kk)

    out_flat = pl.pallas_call(
        kernel,
        out_shape=jax.ShapeDtypeStruct((B, T * C, Sp), jnp.float32),
        grid_spec=pltpu.PrefetchScalarGridSpec(
            num_scalar_prefetch=0,
            grid=grid,
            in_specs=[
                pl.BlockSpec((None, R, S), lambda b, t: (b, t, 0)),
                pl.BlockSpec((S, Sp), lambda b, t: (0, 0)),   # constant: DMA'd once
            ],
            out_specs=pl.BlockSpec((None, R, Sp), lambda b, t: (b, t, 0)),
            scratch_shapes=[
                pltpu.VMEM((C, Sp), jnp.float32),   # membrane potential (persists over t)
                pltpu.VMEM((R, Sp), jnp.float32),   # pooled T-block
            ],
        ),
        compiler_params=pltpu.CompilerParams(
            dimension_semantics=("parallel", "arbitrary"),
            vmem_limit_bytes=vmem_limit,
        ),
    )(x_flat, p_mat)

    # Free reshape back to [B, T, C, Hp, Wp].
    return out_flat.reshape(B, T, C, Hp, Wp)


def _reference_forward(x, k, thresh=1.0, tau=0.5):
    B, T, C, H, W = x.shape
    Hp, Wp = H // k, W // k
    pooled = x[:, :, :, :Hp * k, :Wp * k].reshape(
        B, T, C, Hp, k, Wp, k).mean(axis=(4, 6))
    mem = jnp.zeros((B, C, Hp, Wp), jnp.float32)
    outs = []
    for t in range(T):
        mem = mem * tau + pooled[:, t]
        spike = ((mem - thresh) > 0).astype(jnp.float32)
        mem = (1.0 - spike) * mem
        outs.append(spike)
    return jnp.stack(outs, axis=1)


if __name__ == "__main__":
    key = jax.random.PRNGKey(0)
    B, T, C, H, W = 2, 8, 4, 16, 16
    kernel_size = 2

    x = jax.random.normal(key, (B, T, C, H, W), dtype=jnp.float32)

    out = aplayer_forward(x, kernel_size)
    out = jax.block_until_ready(out)

    assert out.shape == (B, T, C, H // kernel_size, W // kernel_size), out.shape

    ref = _reference_forward(x, kernel_size)
    assert jnp.allclose(out, ref, atol=1e-5), "mismatch vs reference"

    print("KERNEL_OK")
</pallas_src>

<mosaic_0001>
module attributes {stable_mosaic.version = 11 : i64} {
  func.func @_aplayer_kernel(%arg0: i32, %arg1: i32, %arg2: memref<1x32x256xf32, #tpu.memory_space<vmem>>, %arg3: memref<256x64xf32, #tpu.memory_space<vmem>>, %arg4: memref<1x32x64xf32, #tpu.memory_space<vmem>>, %arg5: memref<4x64xf32, #tpu.memory_space<vmem>>, %arg6: memref<32x64xf32, #tpu.memory_space<vmem>>) attributes {dimension_semantics = [#tpu.dimension_semantics<parallel>, #tpu.dimension_semantics<arbitrary>], iteration_bounds = array<i64: 2, 1>, scalar_prefetch = 0 : i64, scratch_operands = 2 : i64, tpu.core_type = #tpu.core_type<tc>, window_params = [{transform_indices = @transform_0, window_bounds = array<i64: 1, 32, 256>}, {pipeline_mode = #tpu.pipeline_mode<synchronous>, transform_indices = @transform_1, window_bounds = array<i64: 256, 64>}, {transform_indices = @transform_2, window_bounds = array<i64: 1, 32, 64>}]} {
    %c0_i32 = arith.constant 0 : i32
    %0 = arith.cmpi eq, %arg1, %c0_i32 : i32
    %1 = arith.extui %0 : i1 to i32
    %c0_i32_0 = arith.constant 0 : i32
    %2 = arith.cmpi ne, %1, %c0_i32_0 : i32
    scf.if %2 {
      %cst_105 = arith.constant 0.000000e+00 : f32
      %154 = vector.broadcast %cst_105 : f32 to vector<4x64xf32>
      %c0_106 = arith.constant 0 : index
      %c0_107 = arith.constant 0 : index
      %155 = vector.load %arg5[%c0_106, %c0_107] : memref<4x64xf32, #tpu.memory_space<vmem>>, vector<4x64xf32>
      tpu.vector_store %arg5[%c0_106, %c0_107], %154 {strides = array<i32>} : memref<4x64xf32, #tpu.memory_space<vmem>>, vector<4x64xf32>,
    } else {
    }
    %c0 = arith.constant 0 : index
    %c0_1 = arith.constant 0 : index
    %c0_2 = arith.constant 0 : index
    %3 = vector.load %arg2[%c0, %c0_1, %c0_2] : memref<1x32x256xf32, #tpu.memory_space<vmem>>, vector<1x32x256xf32>
    %4 = vector.shape_cast %3 : vector<1x32x256xf32> to vector<32x256xf32>
    %c0_3 = arith.constant 0 : index
    %c0_4 = arith.constant 0 : index
    %5 = vector.load %arg3[%c0_3, %c0_4] : memref<256x64xf32, #tpu.memory_space<vmem>>, vector<256x64xf32>
    %cst = arith.constant dense<0.000000e+00> : vector<32x64xf32>
    %6 = tpu.matmul %4, %5, %cst {dimension_numbers = #tpu.dot_dimension_numbers<[1], [0], [0], [1], [0, 0, 1, 1], [], []>} : vector<32x256xf32>, vector<256x64xf32>, vector<32x64xf32> -> vector<32x64xf32>
    %cst_5 = arith.constant 2.500000e-01 : f32
    %7 = vector.broadcast %cst_5 : f32 to vector<32x64xf32>
    %8 = arith.mulf %6, %7 : vector<32x64xf32>
    %c0_6 = arith.constant 0 : index
    %c0_7 = arith.constant 0 : index
    %9 = vector.load %arg6[%c0_6, %c0_7] : memref<32x64xf32, #tpu.memory_space<vmem>>, vector<32x64xf32>
    tpu.vector_store %arg6[%c0_6, %c0_7], %8 {strides = array<i32>} : memref<32x64xf32, #tpu.memory_space<vmem>>, vector<32x64xf32>,
    %c0_8 = arith.constant 0 : index
    %c0_9 = arith.constant 0 : index
    %10 = vector.load %arg5[%c0_8, %c0_9] : memref<4x64xf32, #tpu.memory_space<vmem>>, vector<4x64xf32>
    %cst_10 = arith.constant 5.000000e-01 : f32
    %11 = vector.broadcast %cst_10 : f32 to vector<4x64xf32>
    %12 = arith.mulf %10, %11 : vector<4x64xf32>
    %c0_11 = arith.constant 0 : index
    %c0_12 = arith.constant 0 : index
    %13 = vector.load %arg6[%c0_11, %c0_12] : memref<32x64xf32, #tpu.memory_space<vmem>>, vector<4x64xf32>
    %14 = arith.addf %12, %13 : vector<4x64xf32>
    %cst_13 = arith.constant 1.000000e+00 : f32
    %15 = vector.broadcast %cst_13 : f32 to vector<4x64xf32>
    %16 = arith.subf %14, %15 : vector<4x64xf32>
    %cst_14 = arith.constant 0.000000e+00 : f32
    %17 = vector.broadcast %cst_14 : f32 to vector<4x64xf32>
    %18 = arith.cmpf ogt, %16, %17 : vector<4x64xf32>
    %19 = arith.extui %18 : vector<4x64xi1> to vector<4x64xi32>
    %20 = arith.sitofp %19 : vector<4x64xi32> to vector<4x64xf32>
    %c0_15 = arith.constant 0 : index
    %c0_16 = arith.constant 0 : index
    %c0_17 = arith.constant 0 : index
    %21 = vector.load %arg4[%c0_15, %c0_16, %c0_17] : memref<1x32x64xf32, #tpu.memory_space<vmem>>, vector<1x4x64xf32>
    %22 = vector.shape_cast %21 : vector<1x4x64xf32> to vector<4x64xf32>
    %23 = vector.shape_cast %20 : vector<4x64xf32> to vector<1x4x64xf32>
    tpu.vector_store %arg4[%c0_15, %c0_16, %c0_17], %23 {strides = array<i32>} : memref<1x32x64xf32, #tpu.memory_space<vmem>>, vector<1x4x64xf32>,
    %cst_18 = arith.constant 1.000000e+00 : f32
    %24 = vector.broadcast %cst_18 : f32 to vector<4x64xf32>
    %25 = arith.subf %24, %20 : vector<4x64xf32>
    %26 = arith.mulf %25, %14 : vector<4x64xf32>
    %c0_19 = arith.constant 0 : index
    %c0_20 = arith.constant 0 : index
    %27 = vector.load %arg5[%c0_19, %c0_20] : memref<4x64xf32, #tpu.memory_space<vmem>>, vector<4x64xf32>
    tpu.vector_store %arg5[%c0_19, %c0_20], %26 {strides = array<i32>} : memref<4x64xf32, #tpu.memory_space<vmem>>, vector<4x64xf32>,
    %c0_21 = arith.constant 0 : index
    %c0_22 = arith.constant 0 : index
    %28 = vector.load %arg5[%c0_21, %c0_22] : memref<4x64xf32, #tpu.memory_space<vmem>>, vector<4x64xf32>
    %cst_23 = arith.constant 5.000000e-01 : f32
    %29 = vector.broadcast %cst_23 : f32 to vector<4x64xf32>
    %30 = arith.mulf %28, %29 : vector<4x64xf32>
    %c4 = arith.constant 4 : index
    %c0_24 = arith.constant 0 : index
    %31 = vector.load %arg6[%c4, %c0_24] : memref<32x64xf32, #tpu.memory_space<vmem>>, vector<4x64xf32>
    %32 = arith.addf %30, %31 : vector<4x64xf32>
    %cst_25 = arith.constant 1.000000e+00 : f32
    %33 = vector.broadcast %cst_25 : f32 to vector<4x64xf32>
    %34 = arith.subf %32, %33 : vector<4x64xf32>
    %cst_26 = arith.constant 0.000000e+00 : f32
    %35 = vector.broadcast %cst_26 : f32 to vector<4x64xf32>
    %36 = arith.cmpf ogt, %34, %35 : vector<4x64xf32>
    %37 = arith.extui %36 : vector<4x64xi1> to vector<4x64xi32>
    %38 = arith.sitofp %37 : vector<4x64xi32> to vector<4x64xf32>
    %c0_27 = arith.constant 0 : index
    %c4_28 = arith.constant 4 : index
    %c0_29 = arith.constant 0 : index
    %39 = vector.load %arg4[%c0_27, %c4_28, %c0_29] : memref<1x32x64xf32, #tpu.memory_space<vmem>>, vector<1x4x64xf32>
    %40 = vector.shape_cast %39 : vector<1x4x64xf32> to vector<4x64xf32>
    %41 = vector.shape_cast %38 : vector<4x64xf32> to vector<1x4x64xf32>
    tpu.vector_store %arg4[%c0_27, %c4_28, %c0_29], %41 {strides = array<i32>} : memref<1x32x64xf32, #tpu.memory_space<vmem>>, vector<1x4x64xf32>,
    %cst_30 = arith.constant 1.000000e+00 : f32
    %42 = vector.broadcast %cst_30 : f32 to vector<4x64xf32>
    %43 = arith.subf %42, %38 : vector<4x64xf32>
    %44 = arith.mulf %43, %32 : vector<4x64xf32>
    %c0_31 = arith.constant 0 : index
    %c0_32 = arith.constant 0 : index
    %45 = vector.load %arg5[%c0_31, %c0_32] : memref<4x64xf32, #tpu.memory_space<vmem>>, vector<4x64xf32>
    tpu.vector_store %arg5[%c0_31, %c0_32], %44 {strides = array<i32>} : memref<4x64xf32, #tpu.memory_space<vmem>>, vector<4x64xf32>,
    %c0_33 = arith.constant 0 : index
    %c0_34 = arith.constant 0 : index
    %46 = vector.load %arg5[%c0_33, %c0_34] : memref<4x64xf32, #tpu.memory_space<vmem>>, vector<4x64xf32>
    %cst_35 = arith.constant 5.000000e-01 : f32
    %47 = vector.broadcast %cst_35 : f32 to vector<4x64xf32>
    %48 = arith.mulf %46, %47 : vector<4x64xf32>
    %c8 = arith.constant 8 : index
    %c0_36 = arith.constant 0 : index
    %49 = vector.load %arg6[%c8, %c0_36] : memref<32x64xf32, #tpu.memory_space<vmem>>, vector<4x64xf32>
    %50 = arith.addf %48, %49 : vector<4x64xf32>
    %cst_37 = arith.constant 1.000000e+00 : f32
    %51 = vector.broadcast %cst_37 : f32 to vector<4x64xf32>
    %52 = arith.subf %50, %51 : vector<4x64xf32>
    %cst_38 = arith.constant 0.000000e+00 : f32
    %53 = vector.broadcast %cst_38 : f32 to vector<4x64xf32>
    %54 = arith.cmpf ogt, %52, %53 : vector<4x64xf32>
    %55 = arith.extui %54 : vector<4x64xi1> to vector<4x64xi32>
    %56 = arith.sitofp %55 : vector<4x64xi32> to vector<4x64xf32>
    %c0_39 = arith.constant 0 : index
    %c8_40 = arith.constant 8 : index
    %c0_41 = arith.constant 0 : index
    %57 = vector.load %arg4[%c0_39, %c8_40, %c0_41] : memref<1x32x64xf32, #tpu.memory_space<vmem>>, vector<1x4x64xf32>
    %58 = vector.shape_cast %57 : vector<1x4x64xf32> to vector<4x64xf32>
    %59 = vector.shape_cast %56 : vector<4x64xf32> to vector<1x4x64xf32>
    tpu.vector_store %arg4[%c0_39, %c8_40, %c0_41], %59 {strides = array<i32>} : memref<1x32x64xf32, #tpu.memory_space<vmem>>, vector<1x4x64xf32>,
    %cst_42 = arith.constant 1.000000e+00 : f32
    %60 = vector.broadcast %cst_42 : f32 to vector<4x64xf32>
    %61 = arith.subf %60, %56 : vector<4x64xf32>
    %62 = arith.mulf %61, %50 : vector<4x64xf32>
    %c0_43 = arith.constant 0 : index
    %c0_44 = arith.constant 0 : index
    %63 = vector.load %arg5[%c0_43, %c0_44] : memref<4x64xf32, #tpu.memory_space<vmem>>, vector<4x64xf32>
    tpu.vector_store %arg5[%c0_43, %c0_44], %62 {strides = array<i32>} : memref<4x64xf32, #tpu.memory_space<vmem>>, vector<4x64xf32>,
    %c0_45 = arith.constant 0 : index
    %c0_46 = arith.constant 0 : index
    %64 = vector.load %arg5[%c0_45, %c0_46] : memref<4x64xf32, #tpu.memory_space<vmem>>, vector<4x64xf32>
    %cst_47 = arith.constant 5.000000e-01 : f32
    %65 = vector.broadcast %cst_47 : f32 to vector<4x64xf32>
    %66 = arith.mulf %64, %65 : vector<4x64xf32>
    %c12 = arith.constant 12 : index
    %c0_48 = arith.constant 0 : index
    %67 = vector.load %arg6[%c12, %c0_48] : memref<32x64xf32, #tpu.memory_space<vmem>>, vector<4x64xf32>
    %68 = arith.addf %66, %67 : vector<4x64xf32>
    %cst_49 = arith.constant 1.000000e+00 : f32
    %69 = vector.broadcast %cst_49 : f32 to vector<4x64xf32>
    %70 = arith.subf %68, %69 : vector<4x64xf32>
    %cst_50 = arith.constant 0.000000e+00 : f32
    %71 = vector.broadcast %cst_50 : f32 to vector<4x64xf32>
    %72 = arith.cmpf ogt, %70, %71 : vector<4x64xf32>
    %73 = arith.extui %72 : vector<4x64xi1> to vector<4x64xi32>
    %74 = arith.sitofp %73 : vector<4x64xi32> to vector<4x64xf32>
    %c0_51 = arith.constant 0 : index
    %c12_52 = arith.constant 12 : index
    %c0_53 = arith.constant 0 : index
    %75 = vector.load %arg4[%c0_51, %c12_52, %c0_53] : memref<1x32x64xf32, #tpu.memory_space<vmem>>, vector<1x4x64xf32>
    %76 = vector.shape_cast %75 : vector<1x4x64xf32> to vector<4x64xf32>
    %77 = vector.shape_cast %74 : vector<4x64xf32> to vector<1x4x64xf32>
    tpu.vector_store %arg4[%c0_51, %c12_52, %c0_53], %77 {strides = array<i32>} : memref<1x32x64xf32, #tpu.memory_space<vmem>>, vector<1x4x64xf32>,
    %cst_54 = arith.constant 1.000000e+00 : f32
    %78 = vector.broadcast %cst_54 : f32 to vector<4x64xf32>
    %79 = arith.subf %78, %74 : vector<4x64xf32>
    %80 = arith.mulf %79, %68 : vector<4x64xf32>
    %c0_55 = arith.constant 0 : index
    %c0_56 = arith.constant 0 : index
    %81 = vector.load %arg5[%c0_55, %c0_56] : memref<4x64xf32, #tpu.memory_space<vmem>>, vector<4x64xf32>
    tpu.vector_store %arg5[%c0_55, %c0_56], %80 {strides = array<i32>} : memref<4x64xf32, #tpu.memory_space<vmem>>, vector<4x64xf32>,
    %c0_57 = arith.constant 0 : index
    %c0_58 = arith.constant 0 : index
    %82 = vector.load %arg5[%c0_57, %c0_58] : memref<4x64xf32, #tpu.memory_space<vmem>>, vector<4x64xf32>
    %cst_59 = arith.constant 5.000000e-01 : f32
    %83 = vector.broadcast %cst_59 : f32 to vector<4x64xf32>
    %84 = arith.mulf %82, %83 : vector<4x64xf32>
    %c16 = arith.constant 16 : index
    %c0_60 = arith.constant 0 : index
    %85 = vector.load %arg6[%c16, %c0_60] : memref<32x64xf32, #tpu.memory_space<vmem>>, vector<4x64xf32>
    %86 = arith.addf %84, %85 : vector<4x64xf32>
    %cst_61 = arith.constant 1.000000e+00 : f32
    %87 = vector.broadcast %cst_61 : f32 to vector<4x64xf32>
    %88 = arith.subf %86, %87 : vector<4x64xf32>
    %cst_62 = arith.constant 0.000000e+00 : f32
    %89 = vector.broadcast %cst_62 : f32 to vector<4x64xf32>
    %90 = arith.cmpf ogt, %88, %89 : vector<4x64xf32>
    %91 = arith.extui %90 : vector<4x64xi1> to vector<4x64xi32>
    %92 = arith.sitofp %91 : vector<4x64xi32> to vector<4x64xf32>
    %c0_63 = arith.constant 0 : index
    %c16_64 = arith.constant 16 : index
    %c0_65 = arith.constant 0 : index
    %93 = vector.load %arg4[%c0_63, %c16_64, %c0_65] : memref<1x32x64xf32, #tpu.memory_space<vmem>>, vector<1x4x64xf32>
    %94 = vector.shape_cast %93 : vector<1x4x64xf32> to vector<4x64xf32>
    %95 = vector.shape_cast %92 : vector<4x64xf32> to vector<1x4x64xf32>
    tpu.vector_store %arg4[%c0_63, %c16_64, %c0_65], %95 {strides = array<i32>} : memref<1x32x64xf32, #tpu.memory_space<vmem>>, vector<1x4x64xf32>,
    %cst_66 = arith.constant 1.000000e+00 : f32
    %96 = vector.broadcast %cst_66 : f32 to vector<4x64xf32>
    %97 = arith.subf %96, %92 : vector<4x64xf32>
    %98 = arith.mulf %97, %86 : vector<4x64xf32>
    %c0_67 = arith.constant 0 : index
    %c0_68 = arith.constant 0 : index
    %99 = vector.load %arg5[%c0_67, %c0_68] : memref<4x64xf32, #tpu.memory_space<vmem>>, vector<4x64xf32>
    tpu.vector_store %arg5[%c0_67, %c0_68], %98 {strides = array<i32>} : memref<4x64xf32, #tpu.memory_space<vmem>>, vector<4x64xf32>,
    %c0_69 = arith.constant 0 : index
    %c0_70 = arith.constant 0 : index
    %100 = vector.load %arg5[%c0_69, %c0_70] : memref<4x64xf32, #tpu.memory_space<vmem>>, vector<4x64xf32>
    %cst_71 = arith.constant 5.000000e-01 : f32
    %101 = vector.broadcast %cst_71 : f32 to vector<4x64xf32>
    %102 = arith.mulf %100, %101 : vector<4x64xf32>
    %c20 = arith.constant 20 : index
    %c0_72 = arith.constant 0 : index
    %103 = vector.load %arg6[%c20, %c0_72] : memref<32x64xf32, #tpu.memory_space<vmem>>, vector<4x64xf32>
    %104 = arith.addf %102, %103 : vector<4x64xf32>
    %cst_73 = arith.constant 1.000000e+00 : f32
    %105 = vector.broadcast %cst_73 : f32 to vector<4x64xf32>
    %106 = arith.subf %104, %105 : vector<4x64xf32>
    %cst_74 = arith.constant 0.000000e+00 : f32
    %107 = vector.broadcast %cst_74 : f32 to vector<4x64xf32>
    %108 = arith.cmpf ogt, %106, %107 : vector<4x64xf32>
    %109 = arith.extui %108 : vector<4x64xi1> to vector<4x64xi32>
    %110 = arith.sitofp %109 : vector<4x64xi32> to vector<4x64xf32>
    %c0_75 = arith.constant 0 : index
    %c20_76 = arith.constant 20 : index
    %c0_77 = arith.constant 0 : index
    %111 = vector.load %arg4[%c0_75, %c20_76, %c0_77] : memref<1x32x64xf32, #tpu.memory_space<vmem>>, vector<1x4x64xf32>
    %112 = vector.shape_cast %111 : vector<1x4x64xf32> to vector<4x64xf32>
    %113 = vector.shape_cast %110 : vector<4x64xf32> to vector<1x4x64xf32>
    tpu.vector_store %arg4[%c0_75, %c20_76, %c0_77], %113 {strides = array<i32>} : memref<1x32x64xf32, #tpu.memory_space<vmem>>, vector<1x4x64xf32>,
    %cst_78 = arith.constant 1.000000e+00 : f32
    %114 = vector.broadcast %cst_78 : f32 to vector<4x64xf32>
    %115 = arith.subf %114, %110 : vector<4x64xf32>
    %116 = arith.mulf %115, %104 : vector<4x64xf32>
    %c0_79 = arith.constant 0 : index
    %c0_80 = arith.constant 0 : index
    %117 = vector.load %arg5[%c0_79, %c0_80] : memref<4x64xf32, #tpu.memory_space<vmem>>, vector<4x64xf32>
    tpu.vector_store %arg5[%c0_79, %c0_80], %116 {strides = array<i32>} : memref<4x64xf32, #tpu.memory_space<vmem>>, vector<4x64xf32>,
    %c0_81 = arith.constant 0 : index
    %c0_82 = arith.constant 0 : index
    %118 = vector.load %arg5[%c0_81, %c0_82] : memref<4x64xf32, #tpu.memory_space<vmem>>, vector<4x64xf32>
    %cst_83 = arith.constant 5.000000e-01 : f32
    %119 = vector.broadcast %cst_83 : f32 to vector<4x64xf32>
    %120 = arith.mulf %118, %119 : vector<4x64xf32>
    %c24 = arith.constant 24 : index
    %c0_84 = arith.constant 0 : index
    %121 = vector.load %arg6[%c24, %c0_84] : memref<32x64xf32, #tpu.memory_space<vmem>>, vector<4x64xf32>
    %122 = arith.addf %120, %121 : vector<4x64xf32>
    %cst_85 = arith.constant 1.000000e+00 : f32
    %123 = vector.broadcast %cst_85 : f32 to vector<4x64xf32>
    %124 = arith.subf %122, %123 : vector<4x64xf32>
    %cst_86 = arith.constant 0.000000e+00 : f32
    %125 = vector.broadcast %cst_86 : f32 to vector<4x64xf32>
    %126 = arith.cmpf ogt, %124, %125 : vector<4x64xf32>
    %127 = arith.extui %126 : vector<4x64xi1> to vector<4x64xi32>
    %128 = arith.sitofp %127 : vector<4x64xi32> to vector<4x64xf32>
    %c0_87 = arith.constant 0 : index
    %c24_88 = arith.constant 24 : index
    %c0_89 = arith.constant 0 : index
    %129 = vector.load %arg4[%c0_87, %c24_88, %c0_89] : memref<1x32x64xf32, #tpu.memory_space<vmem>>, vector<1x4x64xf32>
    %130 = vector.shape_cast %129 : vector<1x4x64xf32> to vector<4x64xf32>
    %131 = vector.shape_cast %128 : vector<4x64xf32> to vector<1x4x64xf32>
    tpu.vector_store %arg4[%c0_87, %c24_88, %c0_89], %131 {strides = array<i32>} : memref<1x32x64xf32, #tpu.memory_space<vmem>>, vector<1x4x64xf32>,
    %cst_90 = arith.constant 1.000000e+00 : f32
    %132 = vector.broadcast %cst_90 : f32 to vector<4x64xf32>
    %133 = arith.subf %132, %128 : vector<4x64xf32>
    %134 = arith.mulf %133, %122 : vector<4x64xf32>
    %c0_91 = arith.constant 0 : index
    %c0_92 = arith.constant 0 : index
    %135 = vector.load %arg5[%c0_91, %c0_92] : memref<4x64xf32, #tpu.memory_space<vmem>>, vector<4x64xf32>
    tpu.vector_store %arg5[%c0_91, %c0_92], %134 {strides = array<i32>} : memref<4x64xf32, #tpu.memory_space<vmem>>, vector<4x64xf32>,
    %c0_93 = arith.constant 0 : index
    %c0_94 = arith.constant 0 : index
    %136 = vector.load %arg5[%c0_93, %c0_94] : memref<4x64xf32, #tpu.memory_space<vmem>>, vector<4x64xf32>
    %cst_95 = arith.constant 5.000000e-01 : f32
    %137 = vector.broadcast %cst_95 : f32 to vector<4x64xf32>
    %138 = arith.mulf %136, %137 : vector<4x64xf32>
    %c28 = arith.constant 28 : index
    %c0_96 = arith.constant 0 : index
    %139 = vector.load %arg6[%c28, %c0_96] : memref<32x64xf32, #tpu.memory_space<vmem>>, vector<4x64xf32>
    %140 = arith.addf %138, %139 : vector<4x64xf32>
    %cst_97 = arith.constant 1.000000e+00 : f32
    %141 = vector.broadcast %cst_97 : f32 to vector<4x64xf32>
    %142 = arith.subf %140, %141 : vector<4x64xf32>
    %cst_98 = arith.constant 0.000000e+00 : f32
    %143 = vector.broadcast %cst_98 : f32 to vector<4x64xf32>
    %144 = arith.cmpf ogt, %142, %143 : vector<4x64xf32>
    %145 = arith.extui %144 : vector<4x64xi1> to vector<4x64xi32>
    %146 = arith.sitofp %145 : vector<4x64xi32> to vector<4x64xf32>
    %c0_99 = arith.constant 0 : index
    %c28_100 = arith.constant 28 : index
    %c0_101 = arith.constant 0 : index
    %147 = vector.load %arg4[%c0_99, %c28_100, %c0_101] : memref<1x32x64xf32, #tpu.memory_space<vmem>>, vector<1x4x64xf32>
    %148 = vector.shape_cast %147 : vector<1x4x64xf32> to vector<4x64xf32>
    %149 = vector.shape_cast %146 : vector<4x64xf32> to vector<1x4x64xf32>
    tpu.vector_store %arg4[%c0_99, %c28_100, %c0_101], %149 {strides = array<i32>} : memref<1x32x64xf32, #tpu.memory_space<vmem>>, vector<1x4x64xf32>,
    %cst_102 = arith.constant 1.000000e+00 : f32
    %150 = vector.broadcast %cst_102 : f32 to vector<4x64xf32>
    %151 = arith.subf %150, %146 : vector<4x64xf32>
    %152 = arith.mulf %151, %140 : vector<4x64xf32>
    %c0_103 = arith.constant 0 : index
    %c0_104 = arith.constant 0 : index
    %153 = vector.load %arg5[%c0_103, %c0_104] : memref<4x64xf32, #tpu.memory_space<vmem>>, vector<4x64xf32>
    tpu.vector_store %arg5[%c0_103, %c0_104], %152 {strides = array<i32>} : memref<4x64xf32, #tpu.memory_space<vmem>>, vector<4x64xf32>,
    return
  }
  func.func @transform_0(%arg0: i32, %arg1: i32) -> (i32, i32, i32) {
    %c0_i32 = arith.constant 0 : i32
    %c0_i32_0 = arith.constant 0 : i32
    return %arg0, %arg1, %c0_i32 : i32, i32, i32
  }
  func.func @transform_1(%arg0: i32, %arg1: i32) -> (i32, i32) {
    %c0_i32 = arith.constant 0 : i32
    %c0_i32_0 = arith.constant 0 : i32
    %c0_i32_1 = arith.constant 0 : i32
    return %c0_i32, %c0_i32_0 : i32, i32
  }
  func.func @transform_2(%arg0: i32, %arg1: i32) -> (i32, i32, i32) {
    %c0_i32 = arith.constant 0 : i32
    %c0_i32_0 = arith.constant 0 : i32
    return %arg0, %arg1, %c0_i32 : i32, i32, i32
  }
}

</mosaic_0001>

<bundles_post_ra>
// kernel: tpu_custom_call.1
= control target key start
LH: loop header
LB: loop body
LE: loop exit
PB: predicated region body
PF: predicated region fallthrough
CT: control target
= control target key end

     0   :  { %7 = vsyncpa [#allocation5], 0  ;;  %s1057_s0 = inlined_call_operand.vmem [shape: f32[2,32,256], index: 0, kind: input, shape index: {}]   ;;  %s1058_s1 = inlined_call_operand.vmem [shape: f32[256,64], index: 1, kind: input, shape index: {}]   ;;  %s1059_s2 = inlined_call_operand.hbm [shape: f32[2,32,64], index: 2, kind: output, shape index: {}]  }
   0x1   :  { %9 = vsyncpa [#allocation5 + $0x1], 0  ;;  %s791_s9 = smov 0   ;;  %s793_s10 = smov 0  }
   0x2   :  { %s795_s11 = smov 0   ;;  %s797_s12 = smov 0  }
   0x3   :  { %s799_s13 = smov 0   ;;  %s801_s14 = smov 0  }
   0x4 LB: > { %s511_s15 = sadd.s32 4294967295, %s770_s14   ;;  %s512_s16 = sadd.s32 4294967294, %s770_s14   ;;  %s770_s14 = sphi %s801_s14, %s15_s14   ;;  %s766_s13 = sphi %s799_s13, %s1066_s13   ;;  %s762_s12 = sphi %s797_s12, %s1065_s12   ;;  %s758_s11 = sphi %s795_s11, %s1064_s11   ;;  %s754_s10 = sphi %s793_s10, %s1063_s10   ;;  %s750_s9 = sphi %s791_s9, %s1062_s9  }
   0x5   : > { %s27_s17 = sadd.s32 1, %s766_s13  ;;  %s85_s18 = sadd.s32 1, %s758_s11 }
   0x6   : > { %p29_p0 = scmp.ge.s32.totalorder %s27_s17, 2  ;;  %p95_p1 = scmp.ne.s32.totalorder %s758_s11, %s754_s10 }
   0x7   : > { %p96_p2 = scmp.eq.s32.totalorder %s511_s15, 1  ;;  %p101_p3 = scmp.ne.s32.totalorder %s754_s10, %s750_s9 }
   0x8   : > { %s1068_s17 = smov (%p29_p0, %s27_s17), 0  ;;  %p102_p5 = scmp.eq.s32.totalorder %s512_s16, 1 }
   0x9   : > { %p831_p4 = por %p96_p2, %p95_p1  ;;  %s80_s20 = ssub.s32 %s766_s13, %s1068_s17 }
   0xa   : > { %p515_p6 = scmp.ge.s32.totalorder %s770_s14, 1  ;;  %p83_p7 = scmp.eq.s32.totalorder %s80_s20, 0 }
   0xb   : > { %p838_p8 = por %p102_p5, %p101_p3  ;;  %p137_p9 = scmp.lt.s32.totalorder %s770_s14, 3 }
   0xc   : > { %s844_s22 = scalar_select %p83_p7, %s758_s11, %s85_s18  }
   0xd   : > { %p138_p10 = pnand %p515_p6, %p137_p9 }
   0xe   : > { %v206_v0 = vld [vmem:[%s1058_s1 + $0x80] sm:$0xff] (!%p138_p10)  ;;  %v207_v1 = vld [vmem:[%s1058_s1 + $0x88] sm:$0xff] (!%p138_p10)  ;;  %p165_p11 = scmp.lt.s32.totalorder (!%p138_p10), %s762_s12, 1  ;;  %v208_v5 = vld [vmem:[%s1058_s1 + $0x90] sm:$0xff] (!%p138_p10)  ;;  %vm180_vm0 = vcmask (!%p138_p10), 519168   ;;  %v772_v56 = vmov (!%p138_p10), 0.0  }
   0xf   : > { %141 = sbr.rel (%p138_p10) target bundleno = 436 (0x1b4), region = 28  ;;  %v190_v2 = vld [vmem:[%s1058_s1] sm:$0xff] (!%p138_p10)  ;;  %v586_v3 = vpack.c.bf16 (!%p138_p10), %v207_v1, %v206_v0  ;;  %v191_v4 = vld [vmem:[%s1058_s1 + $0x8] sm:$0xff] (!%p138_p10)  ;;  %v209_v6 = vld [vmem:[%s1058_s1 + $0x98] sm:$0xff] (!%p138_p10)  ;;  %181 = vst.msk [vmem:[#allocation2] sm:$0xf] (!%p138_p10), %vm180_vm0, %v772_v56 }
  0x10   : > { %v588_v7 = vpack.c.bf16 (!%p138_p10), %v191_v4, %v190_v2  ;;  %v590_v8 = vpack.c.bf16 (!%p138_p10), %v209_v6, %v208_v5  ;;  %v192_v9 = vld [vmem:[%s1058_s1 + $0x10] sm:$0xff] (!%p138_p10)  ;;  %v193_v10 = vld [vmem:[%s1058_s1 + $0x18] sm:$0xff] (!%p138_p10)  ;;  %v210_v11 = vld [vmem:[%s1058_s1 + $0xa0] sm:$0xff] (!%p138_p10)  ;;  %vm311_vm1 = vcmask (!%p138_p10), 523264   ;;  %s541_s24 = sshll.u32 (!%p138_p10), %s762_s12, 9  ;;  %s773_s30 = smov (!%p138_p10), [#allocation4]  }
  0x11   : > { %587 = vmatprep.subr.bf16.mxu0 (!%p138_p10), %v586_v3  ;;  %v211_v12 = vld [vmem:[%s1058_s1 + $0xa8] sm:$0xff] (!%p138_p10)  ;;  %618 = vmatprep.subr.bf16.mxu1 (!%p138_p10), %v586_v3  ;;  %v592_v13 = vpack.c.bf16 (!%p138_p10), %v193_v10, %v192_v9  ;;  %v194_v15 = vld [vmem:[%s1058_s1 + $0x20] sm:$0xff] (!%p138_p10)  ;;  %v212_v17 = vld [vmem:[%s1058_s1 + $0xb0] sm:$0xff] (!%p138_p10)  ;;  %s1001_s28 = scalar_lea.hbm (!%p138_p10), %s1059_s2, %s541_s24  ;;  %s696_s3 = sshll.u32 (!%p138_p10), %s773_s30, 4  ;;  %s697_s3 = int_to_ptr.vmem [resolvable:$false] %s696_s3 }
  0x12   : > { %589 = vmatpush3.bf16.msra.mxu0 (!%p138_p10), %v588_v7  ;;  %626 = vmatpush3.bf16.msra.mxu1 (!%p138_p10), %v588_v7  ;;  %v594_v14 = vpack.c.bf16 (!%p138_p10), %v211_v12, %v210_v11  ;;  %v195_v16 = vld [vmem:[%s1058_s1 + $0x28] sm:$0xff] (!%p138_p10)  ;;  %v213_v18 = vld [vmem:[%s1058_s1 + $0xb8] sm:$0xff] (!%p138_p10)  ;;  %v196_v21 = vld [vmem:[%s1058_s1 + $0x30] sm:$0xff] (!%p138_p10)  ;;  %s698_s4 = scalar_lea.vmem (!%p138_p10), %s697_s3, 1024 }
  0x13   : > { %591 = vmatprep.subr.bf16.mxu0 (!%p138_p10), %v590_v8  ;;  %619 = vmatprep.subr.bf16.mxu1 (!%p138_p10), %v590_v8  ;;  %v596_v19 = vpack.c.bf16 (!%p138_p10), %v195_v16, %v194_v15  ;;  %v598_v20 = vpack.c.bf16 (!%p138_p10), %v213_v18, %v212_v17  ;;  %v197_v22 = vld [vmem:[%s1058_s1 + $0x38] sm:$0xff] (!%p138_p10)  ;;  %v214_v23 = vld [vmem:[%s1058_s1 + $0xc0] sm:$0xff] (!%p138_p10)  ;;  %v215_v24 = vld [vmem:[%s1058_s1 + $0xc8] sm:$0xff] (!%p138_p10) }
  0x14   : > { %v600_v26 = vpack.c.bf16 (!%p138_p10), %v197_v22, %v196_v21  ;;  %v602_v28 = vpack.c.bf16 (!%p138_p10), %v215_v24, %v214_v23  ;;  %v198_v29 = vld [vmem:[%s1058_s1 + $0x40] sm:$0xff] (!%p138_p10)  ;;  %v199_v30 = vld [vmem:[%s1058_s1 + $0x48] sm:$0xff] (!%p138_p10)  ;;  %v216_v31 = vld [vmem:[%s1058_s1 + $0xd0] sm:$0xff] (!%p138_p10) }
  0x15   : > { %v217_v32 = vld [vmem:[%s1058_s1 + $0xd8] sm:$0xff] (!%p138_p10)  ;;  %v604_v33 = vpack.c.bf16 (!%p138_p10), %v199_v30, %v198_v29  ;;  %v200_v35 = vld [vmem:[%s1058_s1 + $0x50] sm:$0xff] (!%p138_p10)  ;;  %v218_v37 = vld [vmem:[%s1058_s1 + $0xe0] sm:$0xff] (!%p138_p10) }
  0x16   : > { %s166_s23 = scalar_select %p165_p11, %s762_s12, 1  ;;  %593 = vmatpush3.bf16.msra.mxu0 %v592_v13  ;;  %627 = vmatpush3.bf16.msra.mxu1 %v592_v13  ;;  %v606_v34 = vpack.c.bf16 %v217_v32, %v216_v31  ;;  %v201_v36 = vld [vmem:[%s1058_s1 + $0x58] sm:$0xff]  ;;  %v219_v38 = vld [vmem:[%s1058_s1 + $0xe8] sm:$0xff]  ;;  %v202_v41 = vld [vmem:[%s1058_s1 + $0x60] sm:$0xff] }
  0x17   : > { %595 = vmatprep.subr.bf16.mxu0 %v594_v14  ;;  %620 = vmatprep.subr.bf16.mxu1 %v594_v14  ;;  %v608_v39 = vpack.c.bf16 %v201_v36, %v200_v35  ;;  %v610_v40 = vpack.c.bf16 %v219_v38, %v218_v37  ;;  %v203_v42 = vld [vmem:[%s1058_s1 + $0x68] sm:$0xff]  ;;  %v220_v43 = vld [vmem:[%s1058_s1 + $0xf0] sm:$0xff]  ;;  %v221_v44 = vld [vmem:[%s1058_s1 + $0xf8] sm:$0xff] }
  0x18   : > { %s540_s26 = sshll.u32 %s166_s23, 6  ;;  %v612_v45 = vpack.c.bf16 %v203_v42, %v202_v41  ;;  %v614_v46 = vpack.c.bf16 %v221_v44, %v220_v43  ;;  %v204_v47 = vld [vmem:[%s1058_s1 + $0x70] sm:$0xff]  ;;  %v205_v48 = vld [vmem:[%s1058_s1 + $0x78] sm:$0xff]  ;;  %v316_v7 = vld [vmem:[#allocation2] sm:$0xf] }
  0x19   : > { %s893_s15 = scalar_lea.vmem %s1057_s0, %s540_s26  ;;  %v616_v49 = vpack.c.bf16 %v205_v48, %v204_v47  ;;  %v317_v10 = vmul.f32 0.5, %v316_v7 }
  0x1a   : > { %v183_v25 = vld [vmem:[%s893_s15 + $0x8] sm:$0xff]  ;;  %597 = vmatpush3.bf16.msra.mxu0 %v596_v19  ;;  %628 = vmatpush3.bf16.msra.mxu1 %v596_v19  ;;  %v182_v50 = vld [vmem:[%s893_s15] sm:$0xff]  ;;  %v185_v52 = vld [vmem:[%s893_s15 + $0x18] sm:$0xff] }
  0x1b   : > { %286 = vmatprep.mubr.f32.mxu0 %v183_v25  ;;  %v187_v27 = vld [vmem:[%s893_s15 + $0x28] sm:$0xff]  ;;  %599 = vmatprep.subr.bf16.mxu0 %v598_v20  ;;  %v186_v51 = vld [vmem:[%s893_s15 + $0x20] sm:$0xff]  ;;  %v189_v53 = vld [vmem:[%s893_s15 + $0x38] sm:$0xff] }
  0x1c   : > { %621 = vmatprep.subr.bf16.mxu1 %v598_v20  ;;  %296 = vmatprep.mubr.f32.mxu1 %v187_v27  ;;  %v184_v54 = vld [vmem:[%s893_s15 + $0x10] sm:$0xff] }
  0x1d   : > { %v188_v55 = vld [vmem:[%s893_s15 + $0x30] sm:$0xff]  ;;  %s161_s15 = sand.u32 1, %s754_s10  }
  0x1e   : > { %601 = vmatpush3.bf16.msra.mxu0 %v600_v26  ;;  %629 = vmatpush3.bf16.msra.mxu1 %v600_v26  ;;  %s516_s20 = sshll.u32 %s161_s15, 5  ;;  %s1010_s12 = scalar_lea.sflag [#allocation5], %s161_s15 }
  0x1f   : > { %603 = vmatprep.subr.bf16.mxu0 %v602_v28  ;;  %622 = vmatprep.subr.bf16.mxu1 %v602_v28  ;;  %s967_s23 = scalar_lea.vmem [#allocation4], %s516_s20 }
  0x20   : > { %s429_s25 = sshll.u32 %s967_s23, 4  ;;  %s1003_s25 = int_to_ptr.vmem [resolvable:$true] %s429_s25 }
  0x21   : > { %s692_s29 = scalar_lea.vmem %s1003_s25, 512  ;;  %p699_p1 = scmp.lt.s32.totalorder %s1003_s25, %s697_s3 }
  0x22   : > { %605 = vmatpush3.bf16.msra.mxu0 %v604_v33  ;;  %630 = vmatpush3.bf16.msra.mxu1 %v604_v33  ;;  %p693_p12 = scmp.ne.s32.totalorder %s1003_s25, %s692_s29  ;;  %p700_p2 = scmp.lt.s32.totalorder %s698_s4, %s692_s29 }
  0x23   : > { %607 = vmatprep.subr.bf16.mxu0 %v606_v34  ;;  %623 = vmatprep.subr.bf16.mxu1 %v606_v34 }
  0x24   : > { %p694_p13 = pnand %p693_p12, %p831_p4  ;;  %p701_p3 = por %p700_p2, %p699_p1 }
  0x26   : > { %609 = vmatpush3.bf16.msra.mxu0 %v608_v39  ;;  %631 = vmatpush3.bf16.msra.mxu1 %v608_v39  ;;  %p695_p0 = pneg %p694_p13 }
  0x27   : > { %611 = vmatprep.subr.bf16.mxu0 %v610_v40  ;;  %624 = vmatprep.subr.bf16.mxu1 %v610_v40 }
  0x28   : > { %p702_p5 = pnand %p701_p3, %p695_p0 }
  0x2a   : > { %613 = vmatpush3.bf16.msra.mxu0 %v612_v45  ;;  %632 = vmatpush3.bf16.msra.mxu1 %v612_v45 }
  0x2b   : > { %615 = vmatprep.subr.bf16.mxu0 %v614_v46  ;;  %625 = vmatprep.subr.bf16.mxu1 %v614_v46 }
  0x2e   : > { %617 = vmatpush3.bf16.msra.mxu0 %v616_v49  ;;  %633 = vmatpush3.bf16.msra.mxu1 %v616_v49 }
  0x31   : > { %287 = vmatmul.mubr.f32.vlgmr.msra.gmra.mrb[0].mxu0 %v182_v50  ;;  %297 = vmatmul.mubr.f32.vlgmr.msra.gmra.mrb[0].mxu1 %v186_v51 }
  0x32   : > { %291 = vmatprep.mubr.f32.mxu0 %v185_v52  ;;  %301 = vmatprep.mubr.f32.mxu1 %v189_v53 }
  0x35   : > { %292 = vmatmul.mubr.f32.gmra.mrb[2].mxu0 %v184_v54  ;;  %302 = vmatmul.mubr.f32.gmra.mrb[2].mxu1 %v188_v55 }
 0x104   : > { %v574_v57 = vpop.f32.mrb[0].mxu0  ;;  %v580_v58 = vpop.f32.mrb[0].mxu1 }
 0x105   : > { %v575_v59 = vpop.f32.mrb[1].mxu0  ;;  %v581_v60 = vpop.f32.mrb[1].mxu1 }
 0x106   : > { %v576_v61 = vadd.f32 %v575_v59, %v574_v57  ;;  %v582_v62 = vadd.f32 %v581_v60, %v580_v58 }
 0x108   : > { %v307_v63 = vmul.f32 0.25, %v576_v61  ;;  %v577_v0 = vpop.f32.mrb[2].mxu0  ;;  %v309_v1 = vmul.f32 0.25, %v582_v62  ;;  %v583_v2 = vpop.f32.mrb[2].mxu1 }
 0x109   : > { %v578_v3 = vpop.f32.mrb[3].mxu0  ;;  %v584_v4 = vpop.f32.mrb[3].mxu1 }
 0x10a   : > { %312 = vst.msk [vmem:[#allocation3] sm:$0xff] %vm311_vm1, %v307_v63  ;;  %v579_v5 = vadd.f32 %v578_v3, %v577_v0  ;;  %314 = vst.msk [vmem:[#allocation3 + $0x10] sm:$0xff] %vm311_vm1, %v309_v1  ;;  %v585_v6 = vadd.f32 %v584_v4, %v583_v2 }
 0x10c   : > { %v308_v8 = vmul.f32 0.25, %v579_v5  ;;  %v310_v9 = vmul.f32 0.25, %v585_v6 }
 0x10e   : > { %313 = vst.msk [vmem:[#allocation3 + $0x8] sm:$0xff] %vm311_vm1, %v308_v8  ;;  %315 = vst.msk [vmem:[#allocation3 + $0x18] sm:$0xff] %vm311_vm1, %v310_v9 }
 0x111   : > { %v318_v11 = vld [vmem:[#allocation3] sm:$0xf]  ;;  %v331_v19 = vld [vmem:[#allocation3 + $0x4] sm:$0xf]  ;;  %v367_v42 = vld [vmem:[#allocation3 + $0x10] sm:$0xf] }
 0x112   : > { %v319_v12 = vadd.f32 %v318_v11, %v317_v10  ;;  %v379_v51 = vld [vmem:[#allocation3 + $0x14] sm:$0xf] }
 0x114   : > { %v519_v13 = vadd.f32 -1.0, %v319_v12 }
 0x115   : > { %v343_v26 = vld [vmem:[#allocation3 + $0x8] sm:$0xf]  ;;  %v355_v35 = vld [vmem:[#allocation3 + $0xc] sm:$0xf]  ;;  %v391_v59 = vld [vmem:[#allocation3 + $0x18] sm:$0xf] }
 0x116   : > { %vm321_vm2 = vcmp.gt.f32.partialorder %v519_v13, 0.0  ;;  %v403_v4 = vld [vmem:[#allocation3 + $0x1c] sm:$0xf] }
 0x117   : > { %v520_v14 = vsel %vm321_vm2, 1.0, %v772_v56 }
 0x118   : > { %v326_v15 = vsub.f32 1.0, %v520_v14  ;;  %325 = vst.msk [vmem:[%s967_s23] sm:$0xf] %vm180_vm0, %v520_v14 }
 0x11a   : > { %v327_v16 = vmul.f32 %v326_v15, %v319_v12 }
 0x11c   : > { %328 = vst.msk [vmem:[#allocation2] sm:$0xf] %vm180_vm0, %v327_v16 }
 0x123   : > { %v329_v17 = vld [vmem:[#allocation2] sm:$0xf] }
 0x124   : > { %v330_v18 = vmul.f32 0.5, %v329_v17 }
 0x126   : > { %v332_v20 = vadd.f32 %v331_v19, %v330_v18 }
 0x128   : > { %v521_v21 = vadd.f32 -1.0, %v332_v20 }
 0x12a   : > { %vm334_vm3 = vcmp.gt.f32.partialorder %v521_v21, 0.0 }
 0x12b   : > { %v522_v22 = vsel %vm334_vm3, 1.0, %v772_v56 }
 0x12c   : > { %v338_v23 = vsub.f32 1.0, %v522_v22  ;;  %337 = vst.msk [vmem:[%s967_s23 + $0x4] sm:$0xf] %vm180_vm0, %v522_v22 }
 0x12e   : > { %v339_v24 = vmul.f32 %v338_v23, %v332_v20 }
 0x130   : > { %340 = vst.msk [vmem:[#allocation2] sm:$0xf] %vm180_vm0, %v339_v24 }
 0x137   : > { %v341_v25 = vld [vmem:[#allocation2] sm:$0xf] }
 0x138   : > { %v342_v27 = vmul.f32 0.5, %v341_v25 }
 0x13a   : > { %v344_v28 = vadd.f32 %v343_v26, %v342_v27 }
 0x13c   : > { %v523_v29 = vadd.f32 -1.0, %v344_v28 }
 0x13e   : > { %vm346_vm4 = vcmp.gt.f32.partialorder %v523_v29, 0.0 }
 0x13f   : > { %v524_v30 = vsel %vm346_vm4, 1.0, %v772_v56 }
 0x140   : > { %v350_v31 = vsub.f32 1.0, %v524_v30  ;;  %349 = vst.msk [vmem:[%s967_s23 + $0x8] sm:$0xf] %vm180_vm0, %v524_v30 }
 0x142   : > { %v351_v32 = vmul.f32 %v350_v31, %v344_v28 }
 0x144   : > { %352 = vst.msk [vmem:[#allocation2] sm:$0xf] %vm180_vm0, %v351_v32 }
 0x14b   : > { %v353_v33 = vld [vmem:[#allocation2] sm:$0xf] }
 0x14c   : > { %v354_v34 = vmul.f32 0.5, %v353_v33 }
 0x14e   : > { %v356_v36 = vadd.f32 %v355_v35, %v354_v34 }
 0x150   : > { %v525_v37 = vadd.f32 -1.0, %v356_v36 }
 0x152   : > { %vm358_vm5 = vcmp.gt.f32.partialorder %v525_v37, 0.0 }
 0x153   : > { %v526_v38 = vsel %vm358_vm5, 1.0, %v772_v56 }
 0x154   : > { %v362_v39 = vsub.f32 1.0, %v526_v38  ;;  %361 = vst.msk [vmem:[%s967_s23 + $0xc] sm:$0xf] %vm180_vm0, %v526_v38 }
 0x156   : > { %v363_v40 = vmul.f32 %v362_v39, %v356_v36 }
 0x158   : > { %364 = vst.msk [vmem:[#allocation2] sm:$0xf] %vm180_vm0, %v363_v40 }
 0x15f   : > { %v365_v41 = vld [vmem:[#allocation2] sm:$0xf] }
 0x160   : > { %v366_v43 = vmul.f32 0.5, %v365_v41 }
 0x162   : > { %v368_v44 = vadd.f32 %v367_v42, %v366_v43 }
 0x164   : > { %v527_v45 = vadd.f32 -1.0, %v368_v44 }
 0x166   : > { %vm370_vm6 = vcmp.gt.f32.partialorder %v527_v45, 0.0 }
 0x167   : > { %v528_v46 = vsel %vm370_vm6, 1.0, %v772_v56 }
 0x168   : > { %v374_v47 = vsub.f32 1.0, %v528_v46  ;;  %373 = vst.msk [vmem:[%s967_s23 + $0x10] sm:$0xf] %vm180_vm0, %v528_v46 }
 0x16a   : > { %v375_v48 = vmul.f32 %v374_v47, %v368_v44 }
 0x16c   : > { %376 = vst.msk [vmem:[#allocation2] sm:$0xf] %vm180_vm0, %v375_v48 }
 0x173   : > { %v377_v49 = vld [vmem:[#allocation2] sm:$0xf] }
 0x174   : > { %v378_v50 = vmul.f32 0.5, %v377_v49 }
 0x176   : > { %v380_v52 = vadd.f32 %v379_v51, %v378_v50 }
 0x178   : > { %v529_v53 = vadd.f32 -1.0, %v380_v52 }
 0x17a   : > { %vm382_vm7 = vcmp.gt.f32.partialorder %v529_v53, 0.0 }
 0x17b   : > { %v530_v54 = vsel %vm382_vm7, 1.0, %v772_v56 }
 0x17c   : > { %v386_v55 = vsub.f32 1.0, %v530_v54  ;;  %385 = vst.msk [vmem:[%s967_s23 + $0x14] sm:$0xf] %vm180_vm0, %v530_v54 }
 0x17e   : > { %v387_v57 = vmul.f32 %v386_v55, %v380_v52 }
 0x180   : > { %388 = vst.msk [vmem:[#allocation2] sm:$0xf] %vm180_vm0, %v387_v57 }
 0x187   : > { %v389_v58 = vld [vmem:[#allocation2] sm:$0xf] }
 0x188   : > { %v390_v60 = vmul.f32 0.5, %v389_v58 }
 0x18a   : > { %v392_v61 = vadd.f32 %v391_v59, %v390_v60 }
 0x18c   : > { %v531_v62 = vadd.f32 -1.0, %v392_v61 }
 0x18e   : > { %vm394_vm8 = vcmp.gt.f32.partialorder %v531_v62, 0.0 }
 0x18f   : > { %v532_v63 = vsel %vm394_vm8, 1.0, %v772_v56 }
 0x190   : > { %v398_v0 = vsub.f32 1.0, %v532_v63  ;;  %397 = vst.msk [vmem:[%s967_s23 + $0x18] sm:$0xf] %vm180_vm0, %v532_v63 }
 0x192   : > { %v399_v1 = vmul.f32 %v398_v0, %v392_v61 }
 0x194   : > { %400 = vst.msk [vmem:[#allocation2] sm:$0xf] %vm180_vm0, %v399_v1 }
 0x19b   : > { %v401_v2 = vld [vmem:[#allocation2] sm:$0xf] }
 0x19c   : > { %v402_v3 = vmul.f32 0.5, %v401_v2 }
 0x19e   : > { %v404_v5 = vadd.f32 %v403_v4, %v402_v3 }
 0x1a0   : > { %v533_v6 = vadd.f32 -1.0, %v404_v5 }
 0x1a2   : > { %vm406_vm9 = vcmp.gt.f32.partialorder %v533_v6, 0.0 }
 0x1a3   : > { %v534_v7 = vsel %vm406_vm9, 1.0, %v772_v56 }
 0x1a4   : > { %v410_v8 = vsub.f32 1.0, %v534_v7  ;;  %409 = vst.msk [vmem:[%s967_s23 + $0x1c] sm:$0xf] %vm180_vm0, %v534_v7 }
 0x1a5   : > { %705 = shalt.err (!%p702_p5)
}
 0x1a6   : > { %s706_s5 = scalar_lea.hbm %s1001_s28, 512  ;;  %s710_s8 = scalar_lea.hbm %s1059_s2, 1024 }
 0x1a7   : > { %p707_p6 = scmp.ne.s32.totalorder %s1001_s28, %s706_s5  ;;  %p711_p10 = scmp.lt.u32.totalorder %s1001_s28, %s1059_s2 }
 0x1a8   : > { %p712_p11 = scmp.lt.u32.totalorder %s710_s8, %s706_s5  ;;  %p714_p13 = scmp.lt.u32.totalorder %s706_s5, %s1001_s28 }
 0x1a9   : > { %p708_p7 = pnand %p707_p6, %p831_p4 }
 0x1aa   : > { %p713_p12 = por %p712_p11, %p711_p10 }
 0x1ab   : > { %p709_p9 = pneg %p708_p7 }
 0x1ac   : > { %p715_p0 = por %p714_p13, %p713_p12 }
 0x1ae   : > { %p716_p1 = pnand %p715_p0, %p709_p9 }
 0x1b0   : > { %719 = shalt.err (!%p716_p1)
}
 0x1b1   : > { %s774_s15 = smov 128   ;;  %s775_s20 = smov 8   ;;  %v411_v56 = vmul.f32 %v410_v8, %v404_v5 }
 0x1b2   : > { %634 = dma.vmem_to_hbm [thread:$0]  (%p831_p4), %s1003_s25, 512, %s1001_s28, %s1010_s12, %s774_s15, %s774_s15, %s775_s20  }
 0x1b3   : > { %412 = vst.msk [vmem:[#allocation2] sm:$0xf] %vm180_vm0, %v411_v56 }
 0x1b4 PF: > { %p640_p2 = scmp.ge.s32.totalorder %s770_s14, 2  ;;  %s444_s23 = sand.u32 1, %s750_s9  }
 0x1b5   : > { %s445_s24 = scalar_lea.sflag [#allocation5], %s444_s23 }
 0x1b6   : > { %p637_p3 = pnand %p640_p2, %p838_p8 }
 0x1b8   : > { %745 = dma.done.wait (!%p637_p3), %s445_s24, 512  }
 0x1b9   : > { %747 = vsyncadd (!%p637_p3), %s445_s24, 4294966784  ;;  %s15_s14 = sadd.s32 1, %s770_s14   ;;  %s1062_s9 = smov %s754_s10 }
 0x1ba   : > { %p12_p5 = scmp.ge.s32.totalorder %s15_s14, 4   ;;  %s1063_s10 = smov %s758_s11 }
 0x1bb   : > { %s1064_s11 = smov %s844_s22  ;;  %s1065_s12 = smov %s766_s13 }
 0x1bc   : > { %s1066_s13 = smov %s1068_s17  ;;  %14 = sbr.rel (!%p12_p5) target bundleno = 4 (0x4), region = 67 }
 0x1c3   :  { %450 = vsyncpa [#allocation5], 1 }
 0x1c4   :  { %452 = vsyncpa [#allocation5 + $0x1], 1 }

</bundles_post_ra>
